<compile_context>
chip_gen: v6e
topology: v6e:2x2x1
jax: 0.10.0
libtpu: 0.0.40
codegen_flags: <defaults>
</compile_context>

<pallas_src>
import math

import jax
import jax.numpy as jnp
from jax.experimental import pallas as pl
from jax.experimental.pallas import tpu as pltpu

# ----------------------------- module config --------------------------------
ACTION_DIM = 3
HORIZON_STEPS = 4
COND_DIM = 11
MLP_DIMS = [32, 32, 32]
NUM_MODES = 5
STD_MIN = 0.01
STD_MAX = 1.0

OUTPUT_DIM = ACTION_DIM * HORIZON_STEPS * NUM_MODES          # 60
LOGVAR_MIN = math.log(STD_MIN ** 2)                          # fixed (non-learned) buffer
LOGVAR_MAX = math.log(STD_MAX ** 2)

MEAN_DIMS = [COND_DIM] + MLP_DIMS + [OUTPUT_DIM]
LOGVAR_DIMS = [COND_DIM] + MLP_DIMS + [OUTPUT_DIM]
WEIGHTS_DIMS = [COND_DIM] + MLP_DIMS + [NUM_MODES]
N_LAYERS = len(MEAN_DIMS) - 1                                # 4 Linear layers per head

HID = MLP_DIMS[0]                                            # 32 (all hidden widths equal)
LANES = 128                                                  # fused/padded lane width
# fused output-slab column layout
MEAN_LO, MEAN_HI = 0, OUTPUT_DIM                             # [0, 60)
VAR_LO, VAR_HI = OUTPUT_DIM, 2 * OUTPUT_DIM                  # [60, 120)
WTS_LO, WTS_HI = 2 * OUTPUT_DIM, 2 * OUTPUT_DIM + NUM_MODES  # [120, 125)


def _round_up(x, m):
    return ((x + m - 1) // m) * m


def _cdiv(x, m):
    return (x + m - 1) // m


# ------------------------------- kernel -------------------------------------
def _mish_fast(x):
    # Mish(x) = x * tanh(softplus(x)).  With t = 1 + exp(x):
    #   tanh(log(t)) = (t^2 - 1) / (t^2 + 1)
    # One EUP exp + one EUP approx reciprocal instead of exp + log1p + tanh + div.
    # Clamp before exp: for x >= 20 the ratio is 1 to f32 precision anyway.
    t = 1.0 + jnp.exp(jnp.minimum(x, 20.0))
    t2 = t * t
    return x * (t2 - 1.0) * pl.reciprocal(t2 + 1.0, approx=True)


def gmm_mlp_kernel(x_ref, w0_ref, w_ref, b_ref, out_ref):
    # x_ref:  (TILE_B, COND_DIM)  f32
    # w0_ref: (COND_DIM, 128)     fused layer-0 weight (3 heads side by side)
    # w_ref:  (3, 128, 128)       block-diagonal fused weights for layers 1..3
    # b_ref:  (4, 128)            one fused bias row per layer (f32)
    # out_ref:(TILE_B, 128)       lane-dense output slab (f32)
    cd = w0_ref.dtype                                   # compute dtype (bf16 or f32)
    b = b_ref[...]
    x = x_ref[...].astype(cd)

    h = jnp.dot(x, w0_ref[...], preferred_element_type=jnp.float32) + b[0:1, :]
    h = _mish_fast(h)
    h = jnp.dot(h.astype(cd), w_ref[0], preferred_element_type=jnp.float32) + b[1:2, :]
    h = _mish_fast(h)
    h = jnp.dot(h.astype(cd), w_ref[1], preferred_element_type=jnp.float32) + b[2:3, :]
    h = _mish_fast(h)
    h = jnp.dot(h.astype(cd), w_ref[2], preferred_element_type=jnp.float32) + b[3:4, :]

    # Per-head post-processing, full-width + lane-select (no sub-128 slices).
    # Single EUP exp serves both heads:
    #   mean lanes : tanh(h) = (e-1)/(e+1),  e = exp(min(2h, 80))
    #   var  lanes : scale   = e,            e = exp(0.5*clip(h))
    #   wts  lanes : identity; padding lanes: 0
    lane = jax.lax.broadcasted_iota(jnp.int32, (1, LANES), 1)   # 1-row mask, broadcasts
    is_mean = lane < MEAN_HI
    arg = jnp.where(is_mean,
                    jnp.minimum(2.0 * h, 80.0),
                    0.5 * jnp.clip(h, LOGVAR_MIN, LOGVAR_MAX))
    e = jnp.exp(arg)
    mean_part = (e - 1.0) * pl.reciprocal(e + 1.0, approx=True)
    out = jnp.where(is_mean, mean_part,
                    jnp.where(lane < VAR_HI, e,
                              jnp.where(lane < WTS_HI, h, 0.0)))
    out_ref[...] = out


# --------------------------- host-side fusion --------------------------------
def pack_fused_params(mean_params, logvar_params, weights_params,
                      weight_dtype=jnp.bfloat16):
    """Fuse the three per-head (W, b) lists into block-diagonal, lane-padded
    arrays (done once on the host).  Weights are stored in `weight_dtype`
    (bf16 by default -> native MXU rate); biases stay f32."""
    w0 = jnp.zeros((COND_DIM, LANES), jnp.float32)
    w0 = w0.at[:, 0:HID].set(mean_params[0][0])
    w0 = w0.at[:, HID:2 * HID].set(logvar_params[0][0])
    w0 = w0.at[:, 2 * HID:3 * HID].set(weights_params[0][0])

    def blockdiag_hidden(layer):
        w = jnp.zeros((LANES, LANES), jnp.float32)
        w = w.at[0:HID, 0:HID].set(mean_params[layer][0])
        w = w.at[HID:2 * HID, HID:2 * HID].set(logvar_params[layer][0])
        w = w.at[2 * HID:3 * HID, 2 * HID:3 * HID].set(weights_params[layer][0])
        return w

    w1 = blockdiag_hidden(1)
    w2 = blockdiag_hidden(2)

    w3 = jnp.zeros((LANES, LANES), jnp.float32)
    w3 = w3.at[0:HID, MEAN_LO:MEAN_HI].set(mean_params[3][0])
    w3 = w3.at[HID:2 * HID, VAR_LO:VAR_HI].set(logvar_params[3][0])
    w3 = w3.at[2 * HID:3 * HID, WTS_LO:WTS_HI].set(weights_params[3][0])

    w_stack = jnp.stack([w1, w2, w3], axis=0)            # (3, 128, 128)

    biases = jnp.zeros((N_LAYERS, LANES), jnp.float32)
    for l in range(3):
        biases = biases.at[l, 0:HID].set(mean_params[l][1][0])
        biases = biases.at[l, HID:2 * HID].set(logvar_params[l][1][0])
        biases = biases.at[l, 2 * HID:3 * HID].set(weights_params[l][1][0])
    biases = biases.at[3, MEAN_LO:MEAN_HI].set(mean_params[3][1][0])
    biases = biases.at[3, VAR_LO:VAR_HI].set(logvar_params[3][1][0])
    biases = biases.at[3, WTS_LO:WTS_HI].set(weights_params[3][1][0])

    return w0.astype(weight_dtype), w_stack.astype(weight_dtype), biases


# ------------------------------- wrapper -------------------------------------
def gmm_mlp_forward(state, fused_params, *, tile_b_max=1024):
    """state: (B, cond_dim) float32.  Returns (mean, scale, weights) like the
    PyTorch module: (B, M, H*A), (B, M, H*A), (B, M)."""
    w0, w_stack, biases = fused_params
    B = state.shape[0]

    # Tile choice: at least one sublane (8 rows), at most tile_b_max; for large
    # B cap at ~ceil(B/4) so the grid has >=4 steps (DMA pipelining + v7x's
    # second TensorCore via "parallel").  Per-step working set at 1024 rows is
    # ~1 MiB, far under VMEM on every generation.
    tile_b = max(8, min(tile_b_max, _round_up(_cdiv(B, 4), 8)))
    b_pad = _round_up(B, tile_b)
    if b_pad != B:
        state = jnp.pad(state, ((0, b_pad - B), (0, 0)))
    grid = (b_pad // tile_b,)

    out = pl.pallas_call(
        gmm_mlp_kernel,
        out_shape=jax.ShapeDtypeStruct((b_pad, LANES), jnp.float32),
        grid_spec=pltpu.PrefetchScalarGridSpec(
            num_scalar_prefetch=0,
            grid=grid,
            in_specs=[
                pl.BlockSpec((tile_b, COND_DIM), lambda i: (i, 0)),        # x tile
                pl.BlockSpec((COND_DIM, LANES), lambda i: (0, 0)),         # W0 (resident)
                pl.BlockSpec((3, LANES, LANES), lambda i: (0, 0, 0)),      # W1..W3 (resident)
                pl.BlockSpec((N_LAYERS, LANES), lambda i: (0, 0)),         # biases
            ],
            out_specs=pl.BlockSpec((tile_b, LANES), lambda i: (i, 0)),
        ),
        compiler_params=pltpu.CompilerParams(
            dimension_semantics=("parallel",)),
    )(state, w0, w_stack, biases)

    out = out[:B]
    mean = out[:, MEAN_LO:MEAN_HI].reshape(B, NUM_MODES, HORIZON_STEPS * ACTION_DIM)
    scale = out[:, VAR_LO:VAR_HI].reshape(B, NUM_MODES, HORIZON_STEPS * ACTION_DIM)
    weights = out[:, WTS_LO:WTS_HI].reshape(B, NUM_MODES)
    return mean, scale, weights


# --------------------------- deterministic init ------------------------------
def init_mlp_params(key, dims):
    params = []
    for i in range(len(dims) - 1):
        key, kw, kb = jax.random.split(key, 3)
        fan_in = dims[i]
        w = jax.random.normal(kw, (dims[i], dims[i + 1]), jnp.float32) / math.sqrt(fan_in)
        b = 0.01 * jax.random.normal(kb, (1, dims[i + 1]), jnp.float32)
        params.append((w, b))
    return params, key


# ------------------------- pure-JAX reference --------------------------------
def _mish_ref(x):
    return x * jnp.tanh(jax.nn.softplus(x))


def _mlp_ref(x, wb_pairs):
    h = x
    n = len(wb_pairs)
    for i, (w, b) in enumerate(wb_pairs):
        h = jnp.dot(h, w) + b
        if i < n - 1:
            h = _mish_ref(h)
    return h


def reference_forward(state, mean_params, logvar_params, weights_params):
    """Mirrors the PyTorch module semantics exactly (unfused, f32)."""
    B = state.shape[0]
    out_mean = jnp.tanh(_mlp_ref(state, mean_params))
    out_mean = out_mean.reshape(B, NUM_MODES, HORIZON_STEPS * ACTION_DIM)
    out_logvar = _mlp_ref(state, logvar_params)
    out_logvar = jnp.clip(out_logvar, LOGVAR_MIN, LOGVAR_MAX)
    out_scale = jnp.exp(0.5 * out_logvar).reshape(B, NUM_MODES, HORIZON_STEPS * ACTION_DIM)
    out_weights = _mlp_ref(state, weights_params).reshape(B, NUM_MODES)
    return out_mean, out_scale, out_weights


# --------------------------------- main ---------------------------------------
if __name__ == "__main__":
    key = jax.random.PRNGKey(0)

    mean_params, key = init_mlp_params(key, MEAN_DIMS)
    logvar_params, key = init_mlp_params(key, LOGVAR_DIMS)
    weights_params, key = init_mlp_params(key, WEIGHTS_DIMS)

    fused_bf16 = pack_fused_params(mean_params, logvar_params, weights_params,
                                   weight_dtype=jnp.bfloat16)   # production path
    fused_f32 = pack_fused_params(mean_params, logvar_params, weights_params,
                                  weight_dtype=jnp.float32)     # structural check path

    B = 2
    key, kx = jax.random.split(key)
    state = jax.random.normal(kx, (B, COND_DIM), jnp.float32)  # cond['state'].view(B, -1)

    out_mean, out_scale, out_weights = gmm_mlp_forward(state, fused_bf16)
    jax.block_until_ready((out_mean, out_scale, out_weights))

    ref_mean, ref_scale, ref_weights = reference_forward(
        state, mean_params, logvar_params, weights_params)
    assert out_mean.shape == (B, NUM_MODES, HORIZON_STEPS * ACTION_DIM)
    assert out_scale.shape == (B, NUM_MODES, HORIZON_STEPS * ACTION_DIM)
    assert out_weights.shape == (B, NUM_MODES)
    # bf16 MXU operands (f32 accumulation): ~1e-2 abs parity vs the f32 reference.
    assert jnp.allclose(out_mean, ref_mean, atol=2e-2)
    assert jnp.allclose(out_scale, ref_scale, atol=2e-2)
    assert jnp.allclose(out_weights, ref_weights, atol=2e-2)

    # f32-weight path: validates fused packing / lane layout / Mish + tanh
    # rewrites tightly (tolerance loosened from 1e-4 only for the approx
    # reciprocals in Mish and the merged epilogue).
    f_mean, f_scale, f_weights = gmm_mlp_forward(state, fused_f32)
    jax.block_until_ready((f_mean, f_scale, f_weights))
    assert jnp.allclose(f_mean, ref_mean, atol=5e-3)
    assert jnp.allclose(f_scale, ref_scale, atol=5e-3)
    assert jnp.allclose(f_weights, ref_weights, atol=5e-3)

    # Exercise batch padding + a multi-step grid (tile_b=16, grid=3) on the
    # default bf16 path.
    B2 = 37
    key, kx2 = jax.random.split(key)
    state2 = jax.random.normal(kx2, (B2, COND_DIM), jnp.float32)
    m2, s2, w2 = gmm_mlp_forward(state2, fused_bf16)
    jax.block_until_ready((m2, s2, w2))
    r2m, r2s, r2w = reference_forward(state2, mean_params, logvar_params, weights_params)
    assert jnp.allclose(m2, r2m, atol=2e-2)
    assert jnp.allclose(s2, r2s, atol=2e-2)
    assert jnp.allclose(w2, r2w, atol=2e-2)

    # TODO(synk): optional v6e/v7x-only knob (bf16 elementwise Mish/epilogue)
    # intentionally not applied - it breaks even the relaxed parity on v5e-safe
    # defaults.
    print("KERNEL_OK")
</pallas_src>

<mosaic_0001>
module attributes {stable_mosaic.version = 11 : i64} {
  func.func @gmm_mlp_kernel(%arg0: i32, %arg1: memref<8x11xf32, #tpu.memory_space<vmem>>, %arg2: memref<11x128xbf16, #tpu.memory_space<vmem>>, %arg3: memref<3x128x128xbf16, #tpu.memory_space<vmem>>, %arg4: memref<4x128xf32, #tpu.memory_space<vmem>>, %arg5: memref<8x128xf32, #tpu.memory_space<vmem>>) attributes {dimension_semantics = [#tpu.dimension_semantics<parallel>], iteration_bounds = array<i64: 1>, scalar_prefetch = 0 : i64, scratch_operands = 0 : i64, tpu.core_type = #tpu.core_type<tc>, window_params = [{transform_indices = @transform_0, window_bounds = array<i64: 8, 11>}, {pipeline_mode = #tpu.pipeline_mode<synchronous>, transform_indices = @transform_1, window_bounds = array<i64: 11, 128>}, {pipeline_mode = #tpu.pipeline_mode<synchronous>, transform_indices = @transform_2, window_bounds = array<i64: 3, 128, 128>}, {pipeline_mode = #tpu.pipeline_mode<synchronous>, transform_indices = @transform_3, window_bounds = array<i64: 4, 128>}, {transform_indices = @transform_4, window_bounds = array<i64: 8, 128>}]} {
    %c0 = arith.constant 0 : index
    %c0_0 = arith.constant 0 : index
    %0 = vector.load %arg4[%c0, %c0_0] : memref<4x128xf32, #tpu.memory_space<vmem>>, vector<4x128xf32>
    %c0_1 = arith.constant 0 : index
    %c0_2 = arith.constant 0 : index
    %1 = vector.load %arg1[%c0_1, %c0_2] : memref<8x11xf32, #tpu.memory_space<vmem>>, vector<8x11xf32>
    %2 = arith.truncf %1 : vector<8x11xf32> to vector<8x11xbf16>
    %c0_3 = arith.constant 0 : index
    %c0_4 = arith.constant 0 : index
    %3 = vector.load %arg2[%c0_3, %c0_4] : memref<11x128xbf16, #tpu.memory_space<vmem>>, vector<11x128xbf16>
    %cst = arith.constant dense<0.000000e+00> : vector<8x128xf32>
    %4 = tpu.matmul %2, %3, %cst {dimension_numbers = #tpu.dot_dimension_numbers<[1], [0], [0], [1], [0, 0, 1, 1], [], []>} : vector<8x11xbf16>, vector<11x128xbf16>, vector<8x128xf32> -> vector<8x128xf32>
    %5 = vector.extract_strided_slice %0 {offsets = [0, 0], sizes = [1, 128], strides = [1, 1]} : vector<4x128xf32> to vector<1x128xf32>
    %6 = vector.broadcast %5 : vector<1x128xf32> to vector<8x128xf32>
    %7 = arith.addf %4, %6 : vector<8x128xf32>
    %cst_5 = arith.constant 2.000000e+01 : f32
    %8 = vector.broadcast %cst_5 : f32 to vector<8x128xf32>
    %9 = arith.minimumf %7, %8 : vector<8x128xf32>
    %10 = math.exp %9 : vector<8x128xf32>
    %cst_6 = arith.constant 1.000000e+00 : f32
    %11 = vector.broadcast %cst_6 : f32 to vector<8x128xf32>
    %12 = arith.addf %11, %10 : vector<8x128xf32>
    %13 = arith.mulf %12, %12 : vector<8x128xf32>
    %cst_7 = arith.constant 1.000000e+00 : f32
    %14 = vector.broadcast %cst_7 : f32 to vector<8x128xf32>
    %15 = arith.subf %13, %14 : vector<8x128xf32>
    %16 = arith.mulf %7, %15 : vector<8x128xf32>
    %cst_8 = arith.constant 1.000000e+00 : f32
    %17 = vector.broadcast %cst_8 : f32 to vector<8x128xf32>
    %18 = arith.addf %13, %17 : vector<8x128xf32>
    %19 = tpu.reciprocal %18 {approx = true} : vector<8x128xf32> -> vector<8x128xf32>
    %20 = arith.mulf %16, %19 : vector<8x128xf32>
    %21 = arith.truncf %20 : vector<8x128xf32> to vector<8x128xbf16>
    %c0_9 = arith.constant 0 : index
    %c0_10 = arith.constant 0 : index
    %c0_11 = arith.constant 0 : index
    %22 = vector.load %arg3[%c0_9, %c0_10, %c0_11] : memref<3x128x128xbf16, #tpu.memory_space<vmem>>, vector<1x128x128xbf16>
    %23 = vector.shape_cast %22 : vector<1x128x128xbf16> to vector<128x128xbf16>
    %cst_12 = arith.constant dense<0.000000e+00> : vector<8x128xf32>
    %24 = tpu.matmul %21, %23, %cst_12 {dimension_numbers = #tpu.dot_dimension_numbers<[1], [0], [0], [1], [0, 0, 1, 1], [], []>} : vector<8x128xbf16>, vector<128x128xbf16>, vector<8x128xf32> -> vector<8x128xf32>
    %25 = vector.extract_strided_slice %0 {offsets = [1, 0], sizes = [1, 128], strides = [1, 1]} : vector<4x128xf32> to vector<1x128xf32>
    %26 = vector.broadcast %25 : vector<1x128xf32> to vector<8x128xf32>
    %27 = arith.addf %24, %26 : vector<8x128xf32>
    %cst_13 = arith.constant 2.000000e+01 : f32
    %28 = vector.broadcast %cst_13 : f32 to vector<8x128xf32>
    %29 = arith.minimumf %27, %28 : vector<8x128xf32>
    %30 = math.exp %29 : vector<8x128xf32>
    %cst_14 = arith.constant 1.000000e+00 : f32
    %31 = vector.broadcast %cst_14 : f32 to vector<8x128xf32>
    %32 = arith.addf %31, %30 : vector<8x128xf32>
    %33 = arith.mulf %32, %32 : vector<8x128xf32>
    %cst_15 = arith.constant 1.000000e+00 : f32
    %34 = vector.broadcast %cst_15 : f32 to vector<8x128xf32>
    %35 = arith.subf %33, %34 : vector<8x128xf32>
    %36 = arith.mulf %27, %35 : vector<8x128xf32>
    %cst_16 = arith.constant 1.000000e+00 : f32
    %37 = vector.broadcast %cst_16 : f32 to vector<8x128xf32>
    %38 = arith.addf %33, %37 : vector<8x128xf32>
    %39 = tpu.reciprocal %38 {approx = true} : vector<8x128xf32> -> vector<8x128xf32>
    %40 = arith.mulf %36, %39 : vector<8x128xf32>
    %41 = arith.truncf %40 : vector<8x128xf32> to vector<8x128xbf16>
    %c1 = arith.constant 1 : index
    %c0_17 = arith.constant 0 : index
    %c0_18 = arith.constant 0 : index
    %42 = vector.load %arg3[%c1, %c0_17, %c0_18] : memref<3x128x128xbf16, #tpu.memory_space<vmem>>, vector<1x128x128xbf16>
    %43 = vector.shape_cast %42 : vector<1x128x128xbf16> to vector<128x128xbf16>
    %cst_19 = arith.constant dense<0.000000e+00> : vector<8x128xf32>
    %44 = tpu.matmul %41, %43, %cst_19 {dimension_numbers = #tpu.dot_dimension_numbers<[1], [0], [0], [1], [0, 0, 1, 1], [], []>} : vector<8x128xbf16>, vector<128x128xbf16>, vector<8x128xf32> -> vector<8x128xf32>
    %45 = vector.extract_strided_slice %0 {offsets = [2, 0], sizes = [1, 128], strides = [1, 1]} : vector<4x128xf32> to vector<1x128xf32>
    %46 = vector.broadcast %45 : vector<1x128xf32> to vector<8x128xf32>
    %47 = arith.addf %44, %46 : vector<8x128xf32>
    %cst_20 = arith.constant 2.000000e+01 : f32
    %48 = vector.broadcast %cst_20 : f32 to vector<8x128xf32>
    %49 = arith.minimumf %47, %48 : vector<8x128xf32>
    %50 = math.exp %49 : vector<8x128xf32>
    %cst_21 = arith.constant 1.000000e+00 : f32
    %51 = vector.broadcast %cst_21 : f32 to vector<8x128xf32>
    %52 = arith.addf %51, %50 : vector<8x128xf32>
    %53 = arith.mulf %52, %52 : vector<8x128xf32>
    %cst_22 = arith.constant 1.000000e+00 : f32
    %54 = vector.broadcast %cst_22 : f32 to vector<8x128xf32>
    %55 = arith.subf %53, %54 : vector<8x128xf32>
    %56 = arith.mulf %47, %55 : vector<8x128xf32>
    %cst_23 = arith.constant 1.000000e+00 : f32
    %57 = vector.broadcast %cst_23 : f32 to vector<8x128xf32>
    %58 = arith.addf %53, %57 : vector<8x128xf32>
    %59 = tpu.reciprocal %58 {approx = true} : vector<8x128xf32> -> vector<8x128xf32>
    %60 = arith.mulf %56, %59 : vector<8x128xf32>
    %61 = arith.truncf %60 : vector<8x128xf32> to vector<8x128xbf16>
    %c2 = arith.constant 2 : index
    %c0_24 = arith.constant 0 : index
    %c0_25 = arith.constant 0 : index
    %62 = vector.load %arg3[%c2, %c0_24, %c0_25] : memref<3x128x128xbf16, #tpu.memory_space<vmem>>, vector<1x128x128xbf16>
    %63 = vector.shape_cast %62 : vector<1x128x128xbf16> to vector<128x128xbf16>
    %cst_26 = arith.constant dense<0.000000e+00> : vector<8x128xf32>
    %64 = tpu.matmul %61, %63, %cst_26 {dimension_numbers = #tpu.dot_dimension_numbers<[1], [0], [0], [1], [0, 0, 1, 1], [], []>} : vector<8x128xbf16>, vector<128x128xbf16>, vector<8x128xf32> -> vector<8x128xf32>
    %65 = vector.extract_strided_slice %0 {offsets = [3, 0], sizes = [1, 128], strides = [1, 1]} : vector<4x128xf32> to vector<1x128xf32>
    %66 = vector.broadcast %65 : vector<1x128xf32> to vector<8x128xf32>
    %67 = arith.addf %64, %66 : vector<8x128xf32>
    %68 = tpu.iota {dimensions = array<i32: 1>} : vector<1x128xi32>
    %c60_i32 = arith.constant 60 : i32
    %69 = vector.broadcast %c60_i32 : i32 to vector<1x128xi32>
    %70 = arith.cmpi slt, %68, %69 : vector<1x128xi32>
    %cst_27 = arith.constant 2.000000e+00 : f32
    %71 = vector.broadcast %cst_27 : f32 to vector<8x128xf32>
    %72 = arith.mulf %71, %67 : vector<8x128xf32>
    %cst_28 = arith.constant 8.000000e+01 : f32
    %73 = vector.broadcast %cst_28 : f32 to vector<8x128xf32>
    %74 = arith.minimumf %72, %73 : vector<8x128xf32>
    %cst_29 = arith.constant -9.21034049 : f32
    %cst_30 = arith.constant 0.000000e+00 : f32
    %75 = vector.broadcast %cst_29 : f32 to vector<8x128xf32>
    %76 = arith.maximumf %75, %67 : vector<8x128xf32>
    %77 = vector.broadcast %cst_30 : f32 to vector<8x128xf32>
    %78 = arith.minimumf %77, %76 : vector<8x128xf32>
    %cst_31 = arith.constant 5.000000e-01 : f32
    %79 = vector.broadcast %cst_31 : f32 to vector<8x128xf32>
    %80 = arith.mulf %79, %78 : vector<8x128xf32>
    %81 = vector.shape_cast %70 : vector<1x128xi1> to vector<1x128xi1>
    %82 = vector.broadcast %81 : vector<1x128xi1> to vector<8x128xi1>
    %83 = arith.select %82, %74, %80 : vector<8x128xi1>, vector<8x128xf32>
    %84 = math.exp %83 : vector<8x128xf32>
    %cst_32 = arith.constant 1.000000e+00 : f32
    %85 = vector.broadcast %cst_32 : f32 to vector<8x128xf32>
    %86 = arith.subf %84, %85 : vector<8x128xf32>
    %cst_33 = arith.constant 1.000000e+00 : f32
    %87 = vector.broadcast %cst_33 : f32 to vector<8x128xf32>
    %88 = arith.addf %84, %87 : vector<8x128xf32>
    %89 = tpu.reciprocal %88 {approx = true} : vector<8x128xf32> -> vector<8x128xf32>
    %90 = arith.mulf %86, %89 : vector<8x128xf32>
    %c120_i32 = arith.constant 120 : i32
    %91 = vector.broadcast %c120_i32 : i32 to vector<1x128xi32>
    %92 = arith.cmpi slt, %68, %91 : vector<1x128xi32>
    %c125_i32 = arith.constant 125 : i32
    %93 = vector.broadcast %c125_i32 : i32 to vector<1x128xi32>
    %94 = arith.cmpi slt, %68, %93 : vector<1x128xi32>
    %cst_34 = arith.constant 0.000000e+00 : f32
    %95 = vector.shape_cast %94 : vector<1x128xi1> to vector<1x128xi1>
    %96 = vector.broadcast %95 : vector<1x128xi1> to vector<8x128xi1>
    %97 = vector.broadcast %cst_34 : f32 to vector<8x128xf32>
    %98 = arith.select %96, %67, %97 : vector<8x128xi1>, vector<8x128xf32>
    %99 = vector.shape_cast %92 : vector<1x128xi1> to vector<1x128xi1>
    %100 = vector.broadcast %99 : vector<1x128xi1> to vector<8x128xi1>
    %101 = arith.select %100, %84, %98 : vector<8x128xi1>, vector<8x128xf32>
    %102 = vector.shape_cast %70 : vector<1x128xi1> to vector<1x128xi1>
    %103 = vector.broadcast %102 : vector<1x128xi1> to vector<8x128xi1>
    %104 = arith.select %103, %90, %101 : vector<8x128xi1>, vector<8x128xf32>
    %c0_35 = arith.constant 0 : index
    %c0_36 = arith.constant 0 : index
    %105 = vector.load %arg5[%c0_35, %c0_36] : memref<8x128xf32, #tpu.memory_space<vmem>>, vector<8x128xf32>
    tpu.vector_store %arg5[%c0_35, %c0_36], %104 {strides = array<i32>} : memref<8x128xf32, #tpu.memory_space<vmem>>, vector<8x128xf32>,
    return
  }
  func.func @transform_0(%arg0: i32) -> (i32, i32) {
    %c0_i32 = arith.constant 0 : i32
    %c0_i32_0 = arith.constant 0 : i32
    return %arg0, %c0_i32 : i32, i32
  }
  func.func @transform_1(%arg0: i32) -> (i32, i32) {
    %c0_i32 = arith.constant 0 : i32
    %c0_i32_0 = arith.constant 0 : i32
    %c0_i32_1 = arith.constant 0 : i32
    return %c0_i32, %c0_i32_0 : i32, i32
  }
  func.func @transform_2(%arg0: i32) -> (i32, i32, i32) {
    %c0_i32 = arith.constant 0 : i32
    %c0_i32_0 = arith.constant 0 : i32
    %c0_i32_1 = arith.constant 0 : i32
    %c0_i32_2 = arith.constant 0 : i32
    return %c0_i32, %c0_i32_0, %c0_i32_1 : i32, i32, i32
  }
  func.func @transform_3(%arg0: i32) -> (i32, i32) {
    %c0_i32 = arith.constant 0 : i32
    %c0_i32_0 = arith.constant 0 : i32
    %c0_i32_1 = arith.constant 0 : i32
    return %c0_i32, %c0_i32_0 : i32, i32
  }
  func.func @transform_4(%arg0: i32) -> (i32, i32) {
    %c0_i32 = arith.constant 0 : i32
    %c0_i32_0 = arith.constant 0 : i32
    return %arg0, %c0_i32 : i32, i32
  }
}

</mosaic_0001>

<bundles_post_ra>
// kernel: tpu_custom_call.1
= control target key start
LH: loop header
LB: loop body
LE: loop exit
PB: predicated region body
PF: predicated region fallthrough
CT: control target
= control target key end

     0   :  { %9 = vsyncpa [#allocation3], 0  ;;  %s884_s0 = inlined_call_operand.hbm [shape: f32[8,11], index: 0, kind: input, shape index: {}]   ;;  %s885_s1 = inlined_call_operand.hbm [shape: bf16[11,128], index: 1, kind: input, shape index: {}]   ;;  %s886_s2 = inlined_call_operand.hbm [shape: bf16[3,128,128], index: 2, kind: input, shape index: {}]   ;;  %s887_s3 = inlined_call_operand.vmem [shape: f32[4,128], index: 3, kind: input, shape index: {}]   ;;  %s888_s4 = inlined_call_operand.hbm [shape: f32[8,128], index: 4, kind: output, shape index: {}]  }
   0x1   :  { %10 = vsyncpa [#allocation6], 0 }
   0x2   :  { %11 = vsyncpa [#allocation4], 0  ;;  %s786_s15 = smov [#allocation5]  }
   0x3   :  { %s27_s16 = sshll.u32 %s786_s15, 4  ;;  %s28_s16 = int_to_ptr.vmem [resolvable:$true] %s27_s16 }
   0x4   :  { %s708_s17 = scalar_lea.vmem %s28_s16, 128  ;;  %p713_p1 = scmp.lt.s32.totalorder %s28_s16, %s28_s16 }
   0x5   :  { %p709_p0 = scmp.ne.s32.totalorder %s28_s16, %s708_s17  ;;  %p714_p2 = scmp.lt.s32.totalorder %s708_s17, %s708_s17 }
   0x7   :  { %p715_p3 = por %p714_p2, %p713_p1 }
   0x9   :  { %p716_p4 = pnand %p715_p3, %p709_p0 }
   0xb   :  { %719 = shalt.err (!%p716_p4)
}
   0xc   :  { %s787_s18 = smov 64   ;;  %s788_s19 = smov 4  }
   0xd   :  { %33 = dma.hbm_to_vmem [thread:$0]  %s885_s1, 128, %s28_s16, [#allocation6], %s787_s18, %s787_s18, %s788_s19  }
   0xe   :  { %s789_s22 = smov [#allocation2]   ;;  %s790_s24 = smov [#allocation7]  }
   0xf   :  { %s18_s23 = sshll.u32 %s789_s22, 4  ;;  %s39_s25 = sshll.u32 %s790_s24, 4  ;;  %s19_s23 = int_to_ptr.vmem [resolvable:$true] %s18_s23  ;;  %s40_s25 = int_to_ptr.vmem [resolvable:$true] %s39_s25 }
  0x10   :  { %s728_s26 = scalar_lea.vmem %s19_s23, 128  ;;  %p733_p6 = scmp.lt.s32.totalorder %s19_s23, %s19_s23 }
  0x11   :  { %p729_p5 = scmp.ne.s32.totalorder %s19_s23, %s728_s26  ;;  %p734_p7 = scmp.lt.s32.totalorder %s728_s26, %s728_s26 }
  0x13   :  { %p735_p8 = por %p734_p7, %p733_p6 }
  0x15   :  { %p736_p9 = pnand %p735_p8, %p729_p5 }
  0x17   :  { %739 = shalt.err (!%p736_p9)
}
  0x18   :  { %21 = dma.hbm_to_vmem [thread:$0]  %s884_s0, 128, %s19_s23, [#allocation3]  }
  0x19   :  { %s748_s29 = scalar_lea.vmem %s40_s25, 3072  ;;  %p753_p11 = scmp.lt.s32.totalorder %s40_s25, %s40_s25 }
  0x1a   :  { %p749_p10 = scmp.ne.s32.totalorder %s40_s25, %s748_s29  ;;  %p754_p12 = scmp.lt.s32.totalorder %s748_s29, %s748_s29 }
  0x1c   :  { %p755_p13 = por %p754_p12, %p753_p11 }
  0x1e   :  { %p756_p0 = pnand %p755_p13, %p749_p10 }
  0x20   :  { %759 = shalt.err (!%p756_p0)
}
  0x21   :  { %45 = dma.hbm_to_vmem [thread:$0]  %s886_s2, 3072, %s40_s25, [#allocation6], %s787_s18, %s787_s18, %s788_s19  }
  0x22   :  { %780 = dma.done.wait [#allocation3], 128  }
  0x23   :  { %781 = vsyncadd [#allocation3], 4294967168 }
  0x24   :  { %782 = dma.done.wait [#allocation6], 3200  }
  0x25   :  { %783 = vsyncadd [#allocation6], 4294964096  ;;  %vm76_vm0 = vcmask 1044480   ;;  %v791_v0 = vmov 0.0   ;;  %vm792_vm1 = vmmov 0   ;;  %vm77_vm2 = vcmask 1045504  }
  0x26   :  { %584 = vmatprep.subr.bf16.mxu0 %v791_v0  ;;  %590 = vmatprep.subr.bf16.mxu1 %v791_v0  ;;  %v793_v1 = vmov 65535   ;;  %v659_v4 = vld [vmem:[#allocation5] sm:$0x3f]   ;;  %v59_v5 = vld [vmem:[#allocation2] sm:$0xff]  ;;  %vm72_vm3 = vcmask 89088   ;;  %v662_v10 = vld [vmem:[#allocation7 + $0x28] sm:$0xff]   ;;  %v63_v16 = vlaneseq }
  0x27   :  { %586 = vmatprep.mubr.msk.bf16.mxu0 %vm792_vm1, %v791_v0  ;;  %606 = vmatprep.mubr.msk.bf16.mxu1 %vm792_vm1, %v791_v0  ;;  %v78_v2 = vsel %vm76_vm0, 4294967295, %v793_v1  ;;  %v60_v7 = vpack.c.bf16 %v59_v5, %v59_v5  ;;  %v660_v8 = vld [vmem:[#allocation7 + $0x38] sm:$0xff]   ;;  %v661_v9 = vld [vmem:[#allocation7 + $0x30] sm:$0xff]   ;;  %v663_v11 = vld [vmem:[#allocation7 + $0x20] sm:$0xff]  }
  0x28   :  { %v79_v3 = vsel %vm77_vm2, %v78_v2, 0  ;;  %591 = vmatpush3.bf16.msra.mxu1 %v660_v8  ;;  %v664_v12 = vld [vmem:[#allocation7 + $0x18] sm:$0xff]   ;;  %v665_v13 = vld [vmem:[#allocation7 + $0x10] sm:$0xff]   ;;  %v666_v14 = vld [vmem:[#allocation7 + $0x8] sm:$0xff]   ;;  %v847_v17 = vshrl.u32 %v63_v16, 7 }
  0x29   :  { %v81_v6 = vand.u32 %v659_v4, %v79_v3  ;;  %592 = vmatprep.subr.bf16.mxu1 %v791_v0  ;;  %v667_v15 = vld [vmem:[#allocation7] sm:$0xff]   ;;  %v853_v19 = vld [vmem:[%s887_s3] sm:$0xf]  ;;  %v668_v37 = vld [vmem:[#allocation7 + $0x78] sm:$0xff]   ;;  %s794_s3 = smov [#allocation8]  }
  0x2a   :  { %v65_v18 = vsub.s32 0, %v847_v17  ;;  %v669_v38 = vld [vmem:[#allocation7 + $0x70] sm:$0xff]   ;;  %v670_v39 = vld [vmem:[#allocation7 + $0x68] sm:$0xff]   ;;  %v671_v40 = vld [vmem:[#allocation7 + $0x60] sm:$0xff]   ;;  %v152_v45 = vsub.s32 1, %v847_v17  ;;  %v272_v8 = vsub.s32 2, %v847_v17 }
  0x2b   :  { %585 = vmatpush3.bf16.msra.mxu0 %v81_v6  ;;  %v672_v41 = vld [vmem:[#allocation7 + $0x58] sm:$0xff]   ;;  %v673_v42 = vld [vmem:[#allocation7 + $0x50] sm:$0xff]   ;;  %v674_v43 = vld [vmem:[#allocation7 + $0x48] sm:$0xff]   ;;  %s515_s5 = sshll.u32 %s794_s3, 4  ;;  %s516_s5 = int_to_ptr.vmem [resolvable:$true] %s515_s5 }
  0x2c   :  { %610 = vmatprep.subr.bf16.mxu0 %v791_v0  ;;  %593 = vmatpush3.bf16.msra.mxu1 %v661_v9  ;;  %v66_v20 = vrot.slane %v853_v19, %v65_v18  ;;  %v675_v44 = vld [vmem:[#allocation7 + $0x40] sm:$0xff]   ;;  %v153_v46 = vrot.slane %v853_v19, %v152_v45  ;;  %v676_v63 = vld [vmem:[#allocation7 + $0xb8] sm:$0xff]   ;;  %v677_v1 = vld [vmem:[#allocation7 + $0xb0] sm:$0xff]   ;;  %v273_v9 = vrot.slane %v853_v19, %v272_v8  ;;  %s760_s6 = scalar_lea.vmem %s516_s5, 128  ;;  %p765_p2 = scmp.lt.s32.totalorder %s516_s5, %s516_s5 }
  0x2d   :  { %594 = vmatprep.subr.bf16.mxu1 %v791_v0  ;;  %v678_v2 = vld [vmem:[#allocation7 + $0xa8] sm:$0xff]   ;;  %v679_v3 = vld [vmem:[#allocation7 + $0xa0] sm:$0xff]   ;;  %v680_v4 = vld [vmem:[#allocation7 + $0x98] sm:$0xff]   ;;  %p761_p1 = scmp.ne.s32.totalorder %s516_s5, %s760_s6  ;;  %p766_p3 = scmp.lt.s32.totalorder %s760_s6, %s760_s6 }
  0x2e   :  { %587 = vmatmul.mubr.msk.bf16.vlgmr.msra.gmra.mxu0 %vm72_vm3, %v60_v7  ;;  %v681_v5 = vld [vmem:[#allocation7 + $0x90] sm:$0xff]   ;;  %v682_v6 = vld [vmem:[#allocation7 + $0x88] sm:$0xff]   ;;  %v683_v7 = vld [vmem:[#allocation7 + $0x80] sm:$0xff]  }
  0x2f   :  { %626 = vmatprep.mubr.msk.bf16.mxu0 %vm792_vm1, %v791_v0  ;;  %611 = vmatpush3.bf16.msra.mxu0 %v668_v37  ;;  %p767_p4 = por %p766_p3, %p765_p2 }
  0x30   :  { %595 = vmatpush3.bf16.msra.mxu1 %v662_v10  ;;  %612 = vmatprep.subr.bf16.mxu0 %v791_v0 }
  0x31   :  { %596 = vmatprep.subr.bf16.mxu1 %v791_v0  ;;  %p768_p5 = pnand %p767_p4, %p761_p1 }
  0x33   :  { %613 = vmatpush3.bf16.msra.mxu0 %v669_v38 }
  0x34   :  { %597 = vmatpush3.bf16.msra.mxu1 %v663_v11  ;;  %614 = vmatprep.subr.bf16.mxu0 %v791_v0 }
  0x35   :  { %598 = vmatprep.subr.bf16.mxu1 %v791_v0 }
  0x37   :  { %615 = vmatpush3.bf16.msra.mxu0 %v670_v39 }
  0x38   :  { %599 = vmatpush3.bf16.msra.mxu1 %v664_v12  ;;  %616 = vmatprep.subr.bf16.mxu0 %v791_v0 }
  0x39   :  { %600 = vmatprep.subr.bf16.mxu1 %v791_v0 }
  0x3b   :  { %617 = vmatpush3.bf16.msra.mxu0 %v671_v40 }
  0x3c   :  { %601 = vmatpush3.bf16.msra.mxu1 %v665_v13  ;;  %618 = vmatprep.subr.bf16.mxu0 %v791_v0 }
  0x3d   :  { %602 = vmatprep.subr.bf16.mxu1 %v791_v0 }
  0x3f   :  { %619 = vmatpush3.bf16.msra.mxu0 %v672_v41 }
  0x40   :  { %603 = vmatpush3.bf16.msra.mxu1 %v666_v14  ;;  %620 = vmatprep.subr.bf16.mxu0 %v791_v0 }
  0x41   :  { %604 = vmatprep.subr.bf16.mxu1 %v791_v0 }
  0x43   :  { %621 = vmatpush3.bf16.msra.mxu0 %v673_v42 }
  0x44   :  { %605 = vmatpush3.bf16.msra.mxu1 %v667_v15  ;;  %622 = vmatprep.subr.bf16.mxu0 %v791_v0 }
  0x45   :  { %630 = vmatprep.subr.bf16.mxu1 %v791_v0 }
  0x47   :  { %623 = vmatpush3.bf16.msra.mxu0 %v674_v43 }
  0x48   :  { %624 = vmatprep.subr.bf16.mxu0 %v791_v0 }
  0x4b   :  { %625 = vmatpush3.bf16.msra.mxu0 %v675_v44 }
  0xee   :  { %v117_v21 = vpop.f32.mrf.mxu0 }
  0xef   :  { %v118_v22 = vadd.f32 %v117_v21, %v66_v20 }
  0xf0   :  { %v588_v23 = vpop.f32.mrf.mxu0 }
  0xf1   :  { %v123_v24 = vmin.f32 %v118_v22, 20.0 }
  0xf2   :  { %v120_v25 = vpop.f32.mrf.mxu0 }
  0xf3   :  { %v124_v26 = vmul.f32 1.442695, %v123_v24 }
  0xf4   :  { %v589_v27 = vpop.f32.mrf.mxu0 }
  0xf5   :  { %684 = vpow2.f32 %v124_v26 }
 0x102   :  { %v685_v28 = vpop.eup %684 }
 0x103   :  { %v126_v29 = vadd.f32 1.0, %v685_v28  ;;  %v392_v28 = vsub.s32 3, %v847_v17 }
 0x105   :  { %v127_v30 = vmul.f32 %v126_v29, %v126_v29  ;;  %v393_v29 = vrot.slane %v853_v19, %v392_v28 }
 0x107   :  { %v130_v31 = vadd.f32 1.0, %v127_v30  ;;  %v527_v32 = vadd.f32 -1.0, %v127_v30 }
 0x109   :  { %686 = vrcp.f32 %v130_v31  ;;  %v129_v33 = vmul.f32 %v527_v32, %v118_v22 }
 0x116   :  { %v687_v34 = vpop.eup %686 }
 0x117   :  { %v132_v35 = vmul.f32 %v687_v34, %v129_v33 }
 0x119   :  { %v133_v36 = vpack.c.bf16 %v132_v35, %v132_v35  ;;  %v483_v35 = vand.u32 127, %v63_v16 }
 0x11b   :  { %607 = vmatmul.mubr.bf16.vlgmr.msra.gmra.mxu1 %v133_v36  ;;  %vm484_vm4 = vcmp.lt.s32.totalorder %v483_v35, 60  ;;  %vm500_vm5 = vcmp.lt.s32.totalorder %v483_v35, 125  ;;  %vm499_vm6 = vcmp.lt.s32.totalorder %v483_v35, 120 }
 0x11c   :  { %646 = vmatprep.mubr.msk.bf16.mxu1 %vm792_vm1, %v791_v0  ;;  %631 = vmatpush3.bf16.msra.mxu1 %v676_v63 }
 0x11d   :  { %632 = vmatprep.subr.bf16.mxu1 %v791_v0 }
 0x120   :  { %633 = vmatpush3.bf16.msra.mxu1 %v677_v1 }
 0x121   :  { %634 = vmatprep.subr.bf16.mxu1 %v791_v0 }
 0x124   :  { %635 = vmatpush3.bf16.msra.mxu1 %v678_v2 }
 0x125   :  { %636 = vmatprep.subr.bf16.mxu1 %v791_v0 }
 0x128   :  { %637 = vmatpush3.bf16.msra.mxu1 %v679_v3 }
 0x129   :  { %638 = vmatprep.subr.bf16.mxu1 %v791_v0 }
 0x12c   :  { %639 = vmatpush3.bf16.msra.mxu1 %v680_v4 }
 0x12d   :  { %640 = vmatprep.subr.bf16.mxu1 %v791_v0 }
 0x130   :  { %641 = vmatpush3.bf16.msra.mxu1 %v681_v5 }
 0x131   :  { %642 = vmatprep.subr.bf16.mxu1 %v791_v0 }
 0x134   :  { %643 = vmatpush3.bf16.msra.mxu1 %v682_v6 }
 0x135   :  { %644 = vmatprep.subr.bf16.mxu1 %v791_v0 }
 0x138   :  { %645 = vmatpush3.bf16.msra.mxu1 %v683_v7 }
 0x1db   :  { %v236_v47 = vpop.f32.mrf.mxu1 }
 0x1dc   :  { %v237_v48 = vadd.f32 %v236_v47, %v153_v46 }
 0x1dd   :  { %v608_v49 = vpop.f32.mrf.mxu1 }
 0x1de   :  { %v242_v50 = vmin.f32 %v237_v48, 20.0 }
 0x1df   :  { %v239_v51 = vpop.f32.mrf.mxu1 }
 0x1e0   :  { %v243_v52 = vmul.f32 1.442695, %v242_v50 }
 0x1e1   :  { %v609_v53 = vpop.f32.mrf.mxu1 }
 0x1e2   :  { %688 = vpow2.f32 %v243_v52 }
 0x1ef   :  { %v689_v54 = vpop.eup %688 }
 0x1f0   :  { %v245_v55 = vadd.f32 1.0, %v689_v54 }
 0x1f2   :  { %v246_v56 = vmul.f32 %v245_v55, %v245_v55 }
 0x1f4   :  { %v249_v57 = vadd.f32 1.0, %v246_v56  ;;  %v536_v58 = vadd.f32 -1.0, %v246_v56 }
 0x1f6   :  { %690 = vrcp.f32 %v249_v57  ;;  %v248_v59 = vmul.f32 %v536_v58, %v237_v48 }
 0x203   :  { %v691_v60 = vpop.eup %690 }
 0x204   :  { %v251_v61 = vmul.f32 %v691_v60, %v248_v59 }
 0x206   :  { %v252_v62 = vpack.c.bf16 %v251_v61, %v251_v61 }
 0x208   :  { %627 = vmatmul.mubr.bf16.vlgmr.msra.gmra.mxu0 %v252_v62 }
 0x2c8   :  { %v356_v10 = vpop.f32.mrf.mxu0 }
 0x2c9   :  { %v357_v11 = vadd.f32 %v356_v10, %v273_v9 }
 0x2ca   :  { %v628_v12 = vpop.f32.mrf.mxu0 }
 0x2cb   :  { %v362_v13 = vmin.f32 %v357_v11, 20.0 }
 0x2cc   :  { %v359_v14 = vpop.f32.mrf.mxu0 }
 0x2cd   :  { %v363_v15 = vmul.f32 1.442695, %v362_v13 }
 0x2ce   :  { %v629_v18 = vpop.f32.mrf.mxu0 }
 0x2cf   :  { %692 = vpow2.f32 %v363_v15 }
 0x2dc   :  { %v693_v20 = vpop.eup %692 }
 0x2dd   :  { %v365_v21 = vadd.f32 1.0, %v693_v20 }
 0x2df   :  { %v366_v22 = vmul.f32 %v365_v21, %v365_v21 }
 0x2e1   :  { %v369_v23 = vadd.f32 1.0, %v366_v22  ;;  %v545_v0 = vadd.f32 -1.0, %v366_v22 }
 0x2e3   :  { %694 = vrcp.f32 %v369_v23  ;;  %v368_v24 = vmul.f32 %v545_v0, %v357_v11 }
 0x2f0   :  { %v695_v25 = vpop.eup %694 }
 0x2f1   :  { %v371_v26 = vmul.f32 %v695_v25, %v368_v24 }
 0x2f3   :  { %v372_v27 = vpack.c.bf16 %v371_v26, %v371_v26 }
 0x2f5   :  { %647 = vmatmul.mubr.bf16.vlgmr.msra.gmra.mxu1 %v372_v27 }
 0x3b5   :  { %v476_v30 = vpop.f32.mrf.mxu1 }
 0x3b6   :  { %v477_v31 = vadd.f32 %v476_v30, %v393_v29 }
 0x3b7   :  { %v648_v32 = vpop.f32.mrf.mxu1 }
 0x3b8   :  { %v485_v33 = vmul.f32 2.0, %v477_v31  ;;  %v487_v34 = vmax.f32 %v477_v31, -9.2103405  ;;  %v503_v16 = vsel %vm500_vm5, %v477_v31, 0.0 }
 0x3b9   :  { %v479_v36 = vpop.f32.mrf.mxu1 }
 0x3ba   :  { %v488_v37 = vmin.f32 %v487_v34, 0.0  ;;  %v486_v39 = vmin.f32 %v485_v33, 80.0 }
 0x3bb   :  { %v649_v38 = vpop.f32.mrf.mxu1 }
 0x3bc   :  { %v489_v40 = vmul.f32 0.5, %v488_v37 }
 0x3be   :  { %v492_v41 = vsel %vm484_vm4, %v486_v39, %v489_v40 }
 0x3bf   :  { %v493_v42 = vmul.f32 1.442695, %v492_v41 }
 0x3c1   :  { %696 = vpow2.f32 %v493_v42 }
 0x3ce   :  { %v697_v17 = vpop.eup %696 }
 0x3cf   :  { %v496_v43 = vadd.f32 1.0, %v697_v17  ;;  %v554_v19 = vadd.f32 -1.0, %v697_v17  ;;  %v506_v46 = vsel %vm499_vm6, %v697_v17, %v503_v16 }
 0x3d1   :  { %698 = vrcp.f32 %v496_v43 }
 0x3de   :  { %v699_v44 = vpop.eup %698 }
 0x3df   :  { %v498_v45 = vmul.f32 %v699_v44, %v554_v19 }
 0x3e1   :  { %v507_v47 = vsel %vm484_vm4, %v498_v45, %v506_v46 }
 0x3e2   :  { %508 = vst [vmem:[#allocation8] sm:$0xff] %v507_v47 }
 0x3e3   :  { %771 = shalt.err (!%p768_p5)
}
 0x3e4   :  { %518 = dma.vmem_to_hbm [thread:$0]  %s516_s5, 128, %s888_s4, [#allocation4]  }
 0x3e5   :  { %784 = dma.done.wait [#allocation4], 128  }
 0x3e6   :  { %785 = vsyncadd [#allocation4], 4294967168 }
 0x3e7   :  { %522 = vsyncpa [#allocation3], 1 }
 0x3e8   :  { %523 = vsyncpa [#allocation6], 1 }
 0x3e9   :  { %524 = vsyncpa [#allocation4], 1 }

</bundles_post_ra>
